<compile_context>
chip_gen: v7x
topology: tpu7x:2x2x1
jax: 0.10.0
libtpu: 0.0.40
codegen_flags: <defaults>
</compile_context>

<pallas_src>
import functools
import math

import jax
import jax.numpy as jnp
from jax.experimental import pallas as pl
from jax.experimental.pallas import tpu as pltpu


def _round_up(x, m):
    return (x + m - 1) // m * m


def _layer_norm_kernel(x_ref, w_ref, b_ref, o_ref, *, eps):
    # x_ref/o_ref: (TM, H) tile of rows; w_ref/b_ref: (1, H), f32.
    x = x_ref[...].astype(jnp.float32)
    mean = jnp.mean(x, axis=-1, keepdims=True)
    xc = x - mean
    var = jnp.mean(xc * xc, axis=-1, keepdims=True)
    y = xc * jax.lax.rsqrt(var + jnp.float32(eps))
    # TODO(synk): on v7x with bf16 I/O the f32 VALU epilogue can become the
    # binder; a bf16 epilogue (native bf16 VALU on v6e/v7x) would halve issues
    # but changes rounding vs F.layer_norm, so it is not applied here.
    o_ref[...] = (y * w_ref[...] + b_ref[...]).astype(o_ref.dtype)


def _layer_norm_fold_kernel(x_ref, w_ref, b_ref, sel_ref, selt_ref, o_ref, *,
                            eps, inv_h):
    # Lane-dense path: each (fold*H)-lane row holds `fold` original rows of
    # width H.  Per-segment reduce / broadcast-back use tiny MXU matmuls
    # against precomputed 0/1 selector matrices (sel: (Hl, fold),
    # sel_t: (fold, Hl)) — MXU is otherwise idle in this mem-bound kernel.
    x = x_ref[...].astype(jnp.float32)
    sel = sel_ref[...]
    sel_t = selt_ref[...]
    inv_h_f = jnp.float32(inv_h)
    eps_f = jnp.float32(eps)

    mean_seg = jnp.dot(x, sel, preferred_element_type=jnp.float32) * inv_h_f
    xc = x - jnp.dot(mean_seg, sel_t, preferred_element_type=jnp.float32)
    var_seg = jnp.dot(xc * xc, sel, preferred_element_type=jnp.float32) * inv_h_f
    rstd_seg = jax.lax.rsqrt(var_seg + eps_f)
    y = xc * jnp.dot(rstd_seg, sel_t, preferred_element_type=jnp.float32)
    # TODO(synk): if a v7x bundle dump shows the MXU/vex slot as the binder,
    # fuse the two reduce dots (concat x and x*x along lanes) and the two
    # broadcast-back dots into one each (var = E[x^2] - mean^2 form).
    o_ref[...] = (y * w_ref[...] + b_ref[...]).astype(o_ref.dtype)


def _vmem_capacity_bytes():
    """Best-effort VMEM capacity query; conservative fallback by device kind."""
    try:
        cap = int(pltpu.get_tpu_info().vmem_capacity_bytes)
        if cap > 0:
            return cap
    except Exception:
        pass
    try:
        kind = jax.devices()[0].device_kind.lower()
    except Exception:
        kind = ""
    return (64 << 20) if "v7" in kind else (128 << 20)


def layer_norm_pallas(x, weight=None, bias=None, *, eps=1e-5, row_tile=None):
    """LayerNorm over the last dim of x; weight/bias have shape (H,)."""
    orig_shape = x.shape
    H = orig_shape[-1]
    R = 1
    for d in orig_shape[:-1]:
        R *= d

    if weight is None:
        weight = jnp.ones((H,), jnp.float32)
    if bias is None:
        bias = jnp.zeros((H,), jnp.float32)
    w = weight.reshape(-1).astype(jnp.float32)  # cast once, not per grid step
    b = bias.reshape(-1).astype(jnp.float32)

    # Lane-dense packing: fold consecutive rows into one 128-aligned row
    # whenever H is not a multiple of 128 (contiguous row-major reshape, no
    # data movement).  Generalized: fold = 128 // gcd(H, 128), so e.g.
    # H=32->fold=4, H=96->fold=4 (Hl=384), H=192->fold=2 (Hl=384).
    fold = 128 // math.gcd(H, 128)
    if fold > 1 and R % fold != 0:
        # TODO(synk): rows not divisible by fold -> plain per-row path with
        # masked lanes (correct, just partial vst.msk stores).
        fold = 1
    Hl = fold * H
    R2 = R // fold
    x2 = x.reshape(R2, Hl)
    if fold > 1:
        w = jnp.tile(w, fold)
        b = jnp.tile(b, fold)
    w2 = w.reshape(1, Hl)
    b2 = b.reshape(1, Hl)

    itemsize = x2.dtype.itemsize
    align = 8 if itemsize >= 4 else (16 if itemsize == 2 else 32)

    # Generation-aware per-step byte target and VMEM clamp.
    vmem_cap = _vmem_capacity_bytes()
    if vmem_cap >= (96 << 20):       # v5e / v6e: 128 MiB VMEM
        target_tile_bytes = 8 << 20
        vmem_clamp = 104 << 20
    else:                            # v7x: 64 MiB VMEM per TC
        target_tile_bytes = 4 << 20
        vmem_clamp = 56 << 20

    sel_bytes = 2 * Hl * fold * 4 if fold > 1 else 0
    fixed_bytes = (2 << 20) + sel_bytes + 2 * Hl * 4     # headroom + selectors + w/b
    # Per-row VMEM: double-buffered in+out tiles + ~4 tile-sized f32 temps.
    per_row_bytes = Hl * (4 * itemsize + 4 * 4)

    if row_tile is None:
        # Rows per step from the I/O byte target (itemsize-aware, so bf16
        # moves the same HBM bytes per step as f32); no fixed row cap.
        t = max(1, target_tile_bytes // (Hl * itemsize))
        t = min(t, max(1, (vmem_clamp - fixed_bytes) // per_row_bytes))
        # Keep at least ~4 grid steps so the 2-deep pipeline / megacore
        # (v7x: 2 TCs) have work; don't force more.
        t = min(t, pl.cdiv(R2, 4))
        row_tile = _round_up(max(t, 1), align)
    else:
        row_tile = _round_up(max(int(row_tile), 1), align)

    est = fixed_bytes + row_tile * per_row_bytes
    vmem_limit = int(min(max(est, 32 << 20), vmem_clamp))

    grid = (pl.cdiv(R2, row_tile),)  # ragged last block handled by Pallas masking

    if fold == 1:
        kernel = functools.partial(_layer_norm_kernel, eps=float(eps))
        in_specs = [
            pl.BlockSpec((row_tile, Hl), lambda i: (i, 0)),
            pl.BlockSpec((1, Hl), lambda i: (0, 0)),
            pl.BlockSpec((1, Hl), lambda i: (0, 0)),
        ]
        args = (x2, w2, b2)
    else:
        # Selector matrices built once here (hoisted out of the kernel body).
        lane_seg = jnp.arange(Hl, dtype=jnp.int32) // H          # (Hl,)
        seg_ids = jnp.arange(fold, dtype=jnp.int32)              # (fold,)
        sel = (lane_seg[:, None] == seg_ids[None, :]).astype(jnp.float32)  # (Hl, fold)
        sel_t = sel.T                                            # (fold, Hl)
        kernel = functools.partial(_layer_norm_fold_kernel,
                                   eps=float(eps), inv_h=1.0 / H)
        in_specs = [
            pl.BlockSpec((row_tile, Hl), lambda i: (i, 0)),
            pl.BlockSpec((1, Hl), lambda i: (0, 0)),
            pl.BlockSpec((1, Hl), lambda i: (0, 0)),
            pl.BlockSpec((Hl, fold), lambda i: (0, 0)),
            pl.BlockSpec((fold, Hl), lambda i: (0, 0)),
        ]
        args = (x2, w2, b2, sel, sel_t)

    out = pl.pallas_call(
        kernel,
        out_shape=jax.ShapeDtypeStruct((R2, Hl), x.dtype),
        grid_spec=pltpu.PrefetchScalarGridSpec(
            num_scalar_prefetch=0,
            grid=grid,
            in_specs=in_specs,
            out_specs=pl.BlockSpec((row_tile, Hl), lambda i: (i, 0)),
        ),
        compiler_params=pltpu.CompilerParams(
            dimension_semantics=("parallel",),
            vmem_limit_bytes=vmem_limit,
        ),
    )(*args)

    return out.reshape(orig_shape)


if __name__ == "__main__":
    key = jax.random.PRNGKey(0)

    def reference(x, w, b, eps):
        xf = x.astype(jnp.float32)
        mean = jnp.mean(xf, axis=-1, keepdims=True)
        xc = xf - mean
        var = jnp.mean(xc * xc, axis=-1, keepdims=True)
        y = xc * jax.lax.rsqrt(var + jnp.float32(eps))
        return (y * w.astype(jnp.float32) + b.astype(jnp.float32)).astype(x.dtype)

    # Case 1: narrow hidden (H=32) -> lane-dense fold path (fold=4, Hl=128).
    k1, k2, k3, key = jax.random.split(key, 4)
    x1 = jax.random.normal(k1, (2, 16, 32), jnp.float32)
    w1 = 1.0 + 0.1 * jax.random.normal(k2, (32,), jnp.float32)
    b1 = 0.1 * jax.random.normal(k3, (32,), jnp.float32)
    y1 = jax.block_until_ready(layer_norm_pallas(x1, w1, b1, eps=1e-5))
    assert y1.shape == x1.shape
    assert jnp.allclose(y1, reference(x1, w1, b1, 1e-5), atol=3e-5, rtol=3e-5)

    # Case 2: H >= 128 multiple of 128, row count not a multiple of the tile
    # (exercises the ragged last block).
    k1, k2, k3, key = jax.random.split(key, 4)
    xb = jax.random.normal(k1, (3, 7, 256), jnp.float32)
    wb = 1.0 + 0.1 * jax.random.normal(k2, (256,), jnp.float32)
    bb = 0.1 * jax.random.normal(k3, (256,), jnp.float32)
    yb = jax.block_until_ready(layer_norm_pallas(xb, wb, bb, eps=1e-5))
    assert yb.shape == xb.shape
    assert jnp.allclose(yb, reference(xb, wb, bb, 1e-5), atol=1e-5, rtol=1e-5)

    # Case 3: bf16 I/O (f32 compute inside the kernel), 16-row-aligned tile.
    k1, k2, k3, key = jax.random.split(key, 4)
    xc_ = jax.random.normal(k1, (2, 8, 128), jnp.float32).astype(jnp.bfloat16)
    wc = (1.0 + 0.1 * jax.random.normal(k2, (128,), jnp.float32)).astype(jnp.bfloat16)
    bc = (0.1 * jax.random.normal(k3, (128,), jnp.float32)).astype(jnp.bfloat16)
    yc = jax.block_until_ready(layer_norm_pallas(xc_, wc, bc, eps=1e-5))
    assert yc.shape == xc_.shape
    assert jnp.allclose(yc.astype(jnp.float32),
                        reference(xc_, wc, bc, 1e-5).astype(jnp.float32),
                        atol=2e-2, rtol=2e-2)

    # Case 4: H=192 (not a multiple of 128, > 128) -> generalized lane-dense
    # fold (fold=2, Hl=384), lane-dense unmasked stores.
    k1, k2, k3, key = jax.random.split(key, 4)
    x4 = jax.random.normal(k1, (2, 8, 192), jnp.float32)
    w4 = 1.0 + 0.1 * jax.random.normal(k2, (192,), jnp.float32)
    b4 = 0.1 * jax.random.normal(k3, (192,), jnp.float32)
    y4 = jax.block_until_ready(layer_norm_pallas(x4, w4, b4, eps=1e-5))
    assert y4.shape == x4.shape
    assert jnp.allclose(y4, reference(x4, w4, b4, 1e-5), atol=3e-5, rtol=3e-5)

    print("KERNEL_OK")
</pallas_src>

<mosaic_0001>
module attributes {stable_mosaic.version = 11 : i64} {
  func.func @_layer_norm_fold_kernel(%arg0: i32, %arg1: memref<8x128xf32, #tpu.memory_space<vmem>>, %arg2: memref<1x128xf32, #tpu.memory_space<vmem>>, %arg3: memref<1x128xf32, #tpu.memory_space<vmem>>, %arg4: memref<128x4xf32, #tpu.memory_space<vmem>>, %arg5: memref<4x128xf32, #tpu.memory_space<vmem>>, %arg6: memref<8x128xf32, #tpu.memory_space<vmem>>) attributes {dimension_semantics = [#tpu.dimension_semantics<parallel>], iteration_bounds = array<i64: 1>, scalar_prefetch = 0 : i64, scratch_operands = 0 : i64, tpu.core_type = #tpu.core_type<tc>, window_params = [{transform_indices = @transform_0, window_bounds = array<i64: 8, 128>}, {pipeline_mode = #tpu.pipeline_mode<synchronous>, transform_indices = @transform_1, window_bounds = array<i64: 1, 128>}, {pipeline_mode = #tpu.pipeline_mode<synchronous>, transform_indices = @transform_2, window_bounds = array<i64: 1, 128>}, {pipeline_mode = #tpu.pipeline_mode<synchronous>, transform_indices = @transform_3, window_bounds = array<i64: 128, 4>}, {pipeline_mode = #tpu.pipeline_mode<synchronous>, transform_indices = @transform_4, window_bounds = array<i64: 4, 128>}, {transform_indices = @transform_5, window_bounds = array<i64: 8, 128>}]} {
    %c0 = arith.constant 0 : index
    %c0_0 = arith.constant 0 : index
    %0 = vector.load %arg1[%c0, %c0_0] : memref<8x128xf32, #tpu.memory_space<vmem>>, vector<8x128xf32>
    %c0_1 = arith.constant 0 : index
    %c0_2 = arith.constant 0 : index
    %1 = vector.load %arg4[%c0_1, %c0_2] : memref<128x4xf32, #tpu.memory_space<vmem>>, vector<128x4xf32>
    %c0_3 = arith.constant 0 : index
    %c0_4 = arith.constant 0 : index
    %2 = vector.load %arg5[%c0_3, %c0_4] : memref<4x128xf32, #tpu.memory_space<vmem>>, vector<4x128xf32>
    %cst = arith.constant dense<0.000000e+00> : vector<8x4xf32>
    %3 = tpu.matmul %0, %1, %cst {dimension_numbers = #tpu.dot_dimension_numbers<[1], [0], [0], [1], [0, 0, 1, 1], [], []>} : vector<8x128xf32>, vector<128x4xf32>, vector<8x4xf32> -> vector<8x4xf32>
    %cst_5 = arith.constant 3.125000e-02 : f32
    %4 = vector.broadcast %cst_5 : f32 to vector<8x4xf32>
    %5 = arith.mulf %3, %4 : vector<8x4xf32>
    %cst_6 = arith.constant dense<0.000000e+00> : vector<8x128xf32>
    %6 = tpu.matmul %5, %2, %cst_6 {dimension_numbers = #tpu.dot_dimension_numbers<[1], [0], [0], [1], [0, 0, 1, 1], [], []>} : vector<8x4xf32>, vector<4x128xf32>, vector<8x128xf32> -> vector<8x128xf32>
    %7 = arith.subf %0, %6 : vector<8x128xf32>
    %8 = arith.mulf %7, %7 : vector<8x128xf32>
    %cst_7 = arith.constant dense<0.000000e+00> : vector<8x4xf32>
    %9 = tpu.matmul %8, %1, %cst_7 {dimension_numbers = #tpu.dot_dimension_numbers<[1], [0], [0], [1], [0, 0, 1, 1], [], []>} : vector<8x128xf32>, vector<128x4xf32>, vector<8x4xf32> -> vector<8x4xf32>
    %cst_8 = arith.constant 3.125000e-02 : f32
    %10 = vector.broadcast %cst_8 : f32 to vector<8x4xf32>
    %11 = arith.mulf %9, %10 : vector<8x4xf32>
    %cst_9 = arith.constant 9.99999974E-6 : f32
    %12 = vector.broadcast %cst_9 : f32 to vector<8x4xf32>
    %13 = arith.addf %11, %12 : vector<8x4xf32>
    %14 = math.rsqrt %13 : vector<8x4xf32>
    %cst_10 = arith.constant dense<0.000000e+00> : vector<8x128xf32>
    %15 = tpu.matmul %14, %2, %cst_10 {dimension_numbers = #tpu.dot_dimension_numbers<[1], [0], [0], [1], [0, 0, 1, 1], [], []>} : vector<8x4xf32>, vector<4x128xf32>, vector<8x128xf32> -> vector<8x128xf32>
    %16 = arith.mulf %7, %15 : vector<8x128xf32>
    %c0_11 = arith.constant 0 : index
    %c0_12 = arith.constant 0 : index
    %17 = vector.load %arg2[%c0_11, %c0_12] : memref<1x128xf32, #tpu.memory_space<vmem>>, vector<1x128xf32>
    %18 = vector.broadcast %17 : vector<1x128xf32> to vector<8x128xf32>
    %19 = arith.mulf %16, %18 : vector<8x128xf32>
    %c0_13 = arith.constant 0 : index
    %c0_14 = arith.constant 0 : index
    %20 = vector.load %arg3[%c0_13, %c0_14] : memref<1x128xf32, #tpu.memory_space<vmem>>, vector<1x128xf32>
    %21 = vector.broadcast %20 : vector<1x128xf32> to vector<8x128xf32>
    %22 = arith.addf %19, %21 : vector<8x128xf32>
    %c0_15 = arith.constant 0 : index
    %c0_16 = arith.constant 0 : index
    %23 = vector.load %arg6[%c0_15, %c0_16] : memref<8x128xf32, #tpu.memory_space<vmem>>, vector<8x128xf32>
    tpu.vector_store %arg6[%c0_15, %c0_16], %22 {strides = array<i32>} : memref<8x128xf32, #tpu.memory_space<vmem>>, vector<8x128xf32>,
    return
  }
  func.func @transform_0(%arg0: i32) -> (i32, i32) {
    %c0_i32 = arith.constant 0 : i32
    %c0_i32_0 = arith.constant 0 : i32
    return %arg0, %c0_i32 : i32, i32
  }
  func.func @transform_1(%arg0: i32) -> (i32, i32) {
    %c0_i32 = arith.constant 0 : i32
    %c0_i32_0 = arith.constant 0 : i32
    %c0_i32_1 = arith.constant 0 : i32
    return %c0_i32, %c0_i32_0 : i32, i32
  }
  func.func @transform_2(%arg0: i32) -> (i32, i32) {
    %c0_i32 = arith.constant 0 : i32
    %c0_i32_0 = arith.constant 0 : i32
    %c0_i32_1 = arith.constant 0 : i32
    return %c0_i32, %c0_i32_0 : i32, i32
  }
  func.func @transform_3(%arg0: i32) -> (i32, i32) {
    %c0_i32 = arith.constant 0 : i32
    %c0_i32_0 = arith.constant 0 : i32
    %c0_i32_1 = arith.constant 0 : i32
    return %c0_i32, %c0_i32_0 : i32, i32
  }
  func.func @transform_4(%arg0: i32) -> (i32, i32) {
    %c0_i32 = arith.constant 0 : i32
    %c0_i32_0 = arith.constant 0 : i32
    %c0_i32_1 = arith.constant 0 : i32
    return %c0_i32, %c0_i32_0 : i32, i32
  }
  func.func @transform_5(%arg0: i32) -> (i32, i32) {
    %c0_i32 = arith.constant 0 : i32
    %c0_i32_0 = arith.constant 0 : i32
    return %arg0, %c0_i32 : i32, i32
  }
}

</mosaic_0001>

<bundles_post_ra>
// kernel: tpu_custom_call.1
= control target key start
LH: loop header
LB: loop body
LE: loop exit
PB: predicated region body
PF: predicated region fallthrough
CT: control target
= control target key end

     0   :  { %v570_v3 = vmov 0.0|0.0   ;;  %vm571_vm0 = vmmov 0   ;;  %v572_v6 = vmov 0.0   ;;  %s698_s0 = inlined_call_operand.vmem [shape: f32[8,128], index: 0, kind: input, shape index: {}]   ;;  %s699_s1 = inlined_call_operand.vmem [shape: f32[1,128], index: 1, kind: input, shape index: {}]   ;;  %s700_s2 = inlined_call_operand.vmem [shape: f32[1,128], index: 2, kind: input, shape index: {}]   ;;  %s701_s3 = inlined_call_operand.vmem [shape: f32[128,4], index: 3, kind: input, shape index: {}]   ;;  %s702_s4 = inlined_call_operand.vmem [shape: f32[4,128], index: 4, kind: input, shape index: {}]   ;;  %s703_s5 = inlined_call_operand.hbm [shape: f32[8,128], index: 5, kind: output, shape index: {}]  }
   0x1   :  { %v22_v0 = vld [vmem:[%s701_s3] sm:$0xff]  ;;  %v23_v1 = vld [vmem:[%s701_s3 + $0x8] sm:$0xff]  ;;  %v24_v2 = vld [vmem:[%s701_s3 + $0x10] sm:$0xff]  ;;  %492 = vmatprep.subr.bf16.mxu0 %v570_v3  ;;  %444 = vmatprep.mubr.msk.f32.mxu0 %vm571_vm0, %v572_v6 }
   0x2   :  { %v493_v4 = vpack.c.bf16 %v23_v1, %v22_v0  ;;  %v25_v5 = vld [vmem:[%s701_s3 + $0x18] sm:$0xff]  ;;  %447 = vmatprep.subr.mxu1 %v572_v6  ;;  %449 = vmatprep.mubr.msk.f32.mxu1 %vm571_vm0, %v572_v6  ;;  %v26_v8 = vld [vmem:[%s701_s3 + $0x20] sm:$0xff]  ;;  %v27_v9 = vld [vmem:[%s701_s3 + $0x28] sm:$0xff] }
   0x3   :  { %v496_v7 = vpack.c.bf16 %v25_v5, %v24_v2 }
   0x4   :  { %494 = vmatpush3.bf16.msra.mxu0 %v493_v4 }
   0x5   :  { %495 = vmatprep.subr.bf16.mxu0 %v570_v3 }
   0x6   :  { %10 = vsyncpa [#allocation3], 0  ;;  %v499_v10 = vpack.c.bf16 %v27_v9, %v26_v8  ;;  %v28_v11 = vld [vmem:[%s701_s3 + $0x30] sm:$0xff]  ;;  %v29_v12 = vld [vmem:[%s701_s3 + $0x38] sm:$0xff]  ;;  %vm114_vm1 = vcmask 1043456   ;;  %vm110_vm2 = vcmask 31744  }
   0x7   :  { %v502_v13 = vpack.c.bf16 %v29_v12, %v28_v11  ;;  %v30_v14 = vld [vmem:[%s701_s3 + $0x40] sm:$0xff]  ;;  %v31_v15 = vld [vmem:[%s701_s3 + $0x48] sm:$0xff]  ;;  %v32_v17 = vld [vmem:[%s701_s3 + $0x50] sm:$0xff]  ;;  %s573_s30 = smov [#allocation2]  }
   0x8   :  { %497 = vmatpush3.bf16.msra.mxu0 %v496_v7  ;;  %v505_v16 = vpack.c.bf16 %v31_v15, %v30_v14  ;;  %v33_v18 = vld [vmem:[%s701_s3 + $0x58] sm:$0xff]  ;;  %v34_v20 = vld [vmem:[%s701_s3 + $0x60] sm:$0xff]  ;;  %v35_v21 = vld [vmem:[%s701_s3 + $0x68] sm:$0xff]  ;;  %s360_s6 = sshll.u32 %s573_s30, 4  ;;  %s361_s6 = int_to_ptr.vmem [resolvable:$true] %s360_s6 }
   0x9   :  { %498 = vmatprep.subr.bf16.mxu0 %v570_v3  ;;  %v508_v19 = vpack.c.bf16 %v33_v18, %v32_v17  ;;  %v511_v22 = vpack.c.bf16 %v35_v21, %v34_v20  ;;  %v36_v23 = vld [vmem:[%s701_s3 + $0x70] sm:$0xff]  ;;  %v37_v24 = vld [vmem:[%s701_s3 + $0x78] sm:$0xff]  ;;  %v21_v26 = vld [vmem:[%s698_s0] sm:$0xff]  ;;  %s546_s7 = scalar_lea.vmem %s361_s6, 128  ;;  %p551_p1 = scmp.lt.s32.totalorder %s361_s6, %s361_s6 }
   0xa   :  { %v514_v25 = vpack.c.bf16 %v37_v24, %v36_v23  ;;  %v38_v27 = vld [vmem:[%s702_s4] sm:$0xf]  ;;  %p547_p0 = scmp.ne.s32.totalorder %s361_s6, %s546_s7  ;;  %p552_p2 = scmp.lt.s32.totalorder %s546_s7, %s546_s7 }
   0xb   :  { %448 = vmatpush3.msk.msra.mxu1 %vm114_vm1, %v38_v27  ;;  %v372_v41 = vld [vmem:[%s699_s1] ss:$0 sm:$0xff] }
   0xc   :  { %500 = vmatpush3.bf16.msra.mxu0 %v499_v10  ;;  %516 = vmatprep.subr.bf16.mxu1 %v570_v3  ;;  %v373_v44 = vld [vmem:[%s700_s2] ss:$0 sm:$0xff]  ;;  %p553_p3 = por %p552_p2, %p551_p1 }
   0xd   :  { %501 = vmatprep.subr.bf16.mxu0 %v570_v3 }
   0xe   :  { %p554_p4 = pnand %p553_p3, %p547_p0 }
  0x10   :  { %503 = vmatpush3.bf16.msra.mxu0 %v502_v13 }
  0x11   :  { %504 = vmatprep.subr.bf16.mxu0 %v570_v3 }
  0x14   :  { %506 = vmatpush3.bf16.msra.mxu0 %v505_v16 }
  0x15   :  { %507 = vmatprep.subr.bf16.mxu0 %v570_v3 }
  0x18   :  { %509 = vmatpush3.bf16.msra.mxu0 %v508_v19 }
  0x19   :  { %510 = vmatprep.subr.bf16.mxu0 %v570_v3 }
  0x1c   :  { %512 = vmatpush3.bf16.msra.mxu0 %v511_v22 }
  0x1d   :  { %513 = vmatprep.subr.bf16.mxu0 %v570_v3 }
  0x20   :  { %515 = vmatpush3.bf16.msra.mxu0 %v514_v25 }
  0x21   :  { %487 = vmatprep.subr.mxu0 %v572_v6 }
  0x23   :  { %445 = vmatmul.mubr.f32.vlgmr.msra.gmra.mrb[0].mxu0 %v21_v26 }
  0x24   :  { %489 = vmatprep.mubr.msk.f32.mxu0 %vm571_vm0, %v572_v6  ;;  %488 = vmatpush3.msk.msra.mxu0 %vm114_vm1, %v38_v27 }
  0xf6   :  { %v105_v28 = vpop.f32.mrb[0].mxu0 }
  0xf7   :  { %v109_v29 = vmul.f32 0.03125, %v105_v28  ;;  %v446_v30 = vpop.f32.mrb[1].mxu0 }
  0xf9   :  { %450 = vmatmul.mubr.msk.f32.vlgmr.msra.gmra.mrb[0].mxu1 %vm110_vm2, %v109_v29 }
  0xfa   :  { %518 = vmatpush3.bf16.msra.mxu1 %v493_v4  ;;  %484 = vmatprep.mubr.msk.f32.mxu1 %vm571_vm0, %v572_v6 }
  0xfb   :  { %519 = vmatprep.subr.bf16.mxu1 %v570_v3 }
  0xfe   :  { %521 = vmatpush3.bf16.msra.mxu1 %v496_v7 }
  0xff   :  { %522 = vmatprep.subr.bf16.mxu1 %v570_v3 }
 0x102   :  { %524 = vmatpush3.bf16.msra.mxu1 %v499_v10 }
 0x103   :  { %525 = vmatprep.subr.bf16.mxu1 %v570_v3 }
 0x106   :  { %527 = vmatpush3.bf16.msra.mxu1 %v502_v13 }
 0x107   :  { %528 = vmatprep.subr.bf16.mxu1 %v570_v3 }
 0x10a   :  { %530 = vmatpush3.bf16.msra.mxu1 %v505_v16 }
 0x10b   :  { %531 = vmatprep.subr.bf16.mxu1 %v570_v3 }
 0x10e   :  { %533 = vmatpush3.bf16.msra.mxu1 %v508_v19 }
 0x10f   :  { %534 = vmatprep.subr.bf16.mxu1 %v570_v3 }
 0x112   :  { %536 = vmatpush3.bf16.msra.mxu1 %v511_v22 }
 0x113   :  { %537 = vmatprep.subr.bf16.mxu1 %v570_v3 }
 0x116   :  { %539 = vmatpush3.bf16.msra.mxu1 %v514_v25 }
 0x1cc   :  { %v184_v31 = vpop.f32.mrb[0].mxu1 }
 0x1cd   :  { %v188_v32 = vsub.f32 %v21_v26, %v184_v31  ;;  %v451_v33 = vpop.f32.mrb[1].mxu1 }
 0x1cf   :  { %v189_v34 = vmul.f32 %v188_v32, %v188_v32 }
 0x1d1   :  { %485 = vmatmul.mubr.f32.vlgmr.msra.gmra.mrb[2].mxu1 %v189_v34 }
 0x2a4   :  { %v256_v35 = vpop.f32.mrb[2].mxu1 }
 0x2a5   :  { %v260_v36 = vmul.f32 0.03125, %v256_v35  ;;  %v486_v37 = vpop.f32.mrb[3].mxu1 }
 0x2a7   :  { %v261_v38 = vadd.f32 1e-05, %v260_v36 }
 0x2a9   :  { %544 = vrsqrt.f32 %v261_v38 }
 0x2b3   :  { %v545_v39 = vpop.eup %544 }
 0x2b4   :  { %490 = vmatmul.mubr.msk.f32.vlgmr.msra.gmra.mrb[2].mxu0 %vm110_vm2, %v545_v39 }
 0x387   :  { %v332_v40 = vpop.f32.mrb[2].mxu0 }
 0x388   :  { %v336_v42 = vmul.f32 %v332_v40, %v188_v32  ;;  %v491_v43 = vpop.f32.mrb[3].mxu0 }
 0x38a   :  { %v344_v45 = vmul.f32 %v372_v41, %v336_v42 }
 0x38c   :  { %v352_v46 = vadd.f32 %v373_v44, %v344_v45 }
 0x38e   :  { %353 = vst [vmem:[#allocation2] sm:$0xff] %v352_v46 }
 0x38f   :  { %557 = shalt.err (!%p554_p4)
}
 0x390   :  { %s558_s9 = scalar_lea.hbm %s703_s5, 128 }
 0x391   :  { %p559_p5 = scmp.ne.s32.totalorder %s703_s5, %s558_s9  ;;  %p562_p6 = scmp.lt.u32.totalorder %s558_s9, %s703_s5 }
 0x393   :  { %p564_p7 = pnand %p562_p6, %p559_p5 }
 0x395   :  { %567 = shalt.err (!%p564_p7)
}
 0x396   :  { %363 = dma.vmem_to_hbm [thread:$0]  %s361_s6, 128, %s703_s5, [#allocation3]  }
 0x397   :  { %568 = dma.done.wait [#allocation3], 128  }
 0x398   :  { %569 = vsyncadd [#allocation3], 4294967168 }
 0x399   :  { %367 = vsyncpa [#allocation3], 1 }

</bundles_post_ra>
